<compile_context>
chip_gen: v5e
topology: v5e:2x2
jax: 0.10.0
libtpu: 0.0.40
codegen_flags: <defaults>
</compile_context>

<pallas_src>
import jax
import jax.numpy as jnp
from jax.experimental import pallas as pl
from jax.experimental.pallas import tpu as pltpu


def _round_up(x, m):
    return ((x + m - 1) // m) * m


def _keyword_attn_kernel(x_ref, wproj_ref, const_ref, o_ref):
    # x_ref:     (rt, H)   tile of flattened hidden rows (input dtype)
    # wproj_ref: (H, K)    projection weight, pre-transposed (input dtype)
    # const_ref: (2, K)    row 0 = proj bias, row 1 = softmax(kw_weights), f32
    # o_ref:     (rt, H)
    x = x_ref[...]
    const = const_ref[...]                                            # (2, K) f32
    bias = const[0:1, :]                                              # (1, K)
    sm = const[1:2, :]                                                # (1, K)

    # projection + tanh (MXU matmul, f32 accumulate; EUP tanh)
    scores = jnp.tanh(
        jnp.dot(x, wproj_ref[...], preferred_element_type=jnp.float32) + bias
    )                                                                 # (rt, K) f32

    # per-row attention score (K is tiny; cross-lane reduce on the XLU)
    attn = jnp.sum(scores * sm, axis=-1, keepdims=True)               # (rt, 1) f32

    # scale the hidden states in f32, cast only on the store
    o_ref[...] = (x.astype(jnp.float32) * attn).astype(o_ref.dtype)


def _tpu_vmem_capacity_bytes():
    """Physical VMEM per TensorCore; conservative (v7x, 64 MiB) fallback if the
    query is unavailable in this JAX build."""
    try:
        return int(pltpu.get_tpu_info().vmem_capacity_bytes)
    except Exception:
        return 64 * 1024 * 1024


def keyword_self_attention(hidden_states, proj_weight, proj_bias, kw_weights,
                           *, row_tile=None):
    """hidden_states: (B, S, H); proj_weight: (K, H) torch-style; proj_bias: (K,);
    kw_weights: (K,). Returns (B, S, H)."""
    B, S, H = hidden_states.shape
    K = kw_weights.shape[0]
    dtype = hidden_states.dtype
    itemsize = jnp.dtype(dtype).itemsize

    # --- parameter-only preprocessing (hoisted out of the kernel) -----------
    sm = jax.nn.softmax(kw_weights.astype(jnp.float32), axis=-1)
    const = jnp.stack([proj_bias.astype(jnp.float32), sm], axis=0)    # (2, K)
    wproj = proj_weight.T.astype(dtype)                               # (H, K)

    # --- tiling (generation-aware; wrapper stays zero-copy) -----------------
    M = B * S
    x = hidden_states.reshape(M, H)

    min_rows = 16 if itemsize == 2 else 8       # sublane granularity bf16/f32
    lane_bytes = _round_up(H, 128) * itemsize   # VMEM layout rounds lanes to 128

    vmem_cap = _tpu_vmem_capacity_bytes()
    if vmem_cap >= 100 * 1024 * 1024:
        # v5e / v6e: 128 MiB VMEM, single TensorCore -> few, very large tiles.
        tile_budget = 96 * 1024 * 1024
        vmem_limit = 112 * 1024 * 1024
        target_steps = 1
    else:
        # v7x: 64 MiB VMEM per TC, 2 TCs -> ~4 steps so each core gets >= 2.
        tile_budget = 40 * 1024 * 1024
        vmem_limit = 56 * 1024 * 1024
        target_steps = 4

    # x + out tiles, double-buffered -> 4 live row buffers of rt * lane_bytes.
    max_rows_by_vmem = max(min_rows,
                           (tile_budget // (4 * lane_bytes))
                           // min_rows * min_rows)
    rows_per_step = _round_up(max(1, pl.cdiv(M, target_steps)), min_rows)

    rt = min(max_rows_by_vmem, rows_per_step)
    if row_tile is not None:
        rt = min(rt, row_tile)
    rt = max(min_rows, (rt // min_rows) * min_rows)

    grid = (pl.cdiv(M, rt),)   # ragged last block is masked by Pallas

    out = pl.pallas_call(
        _keyword_attn_kernel,
        out_shape=jax.ShapeDtypeStruct((M, H), dtype),
        grid_spec=pltpu.PrefetchScalarGridSpec(
            num_scalar_prefetch=0,
            grid=grid,
            in_specs=[
                pl.BlockSpec((rt, H), lambda i: (i, 0)),   # hidden rows
                pl.BlockSpec((H, K), lambda i: (0, 0)),    # proj weight (resident)
                pl.BlockSpec((2, K), lambda i: (0, 0)),    # [bias; softmax(kw)]
            ],
            out_specs=pl.BlockSpec((rt, H), lambda i: (i, 0)),
        ),
        compiler_params=pltpu.CompilerParams(
            dimension_semantics=("parallel",),
            vmem_limit_bytes=vmem_limit,
        ),
    )(x, wproj, const)

    return out.reshape(B, S, H)


def _reference(hidden_states, proj_weight, proj_bias, kw_weights):
    h = hidden_states.astype(jnp.float32)
    scores = jnp.tanh(
        jnp.einsum("bsh,kh->bsk", h, proj_weight.astype(jnp.float32))
        + proj_bias.astype(jnp.float32))
    smw = jax.nn.softmax(kw_weights.astype(jnp.float32), axis=-1)
    attn = jnp.einsum("bsk,k->bs", scores, smw)
    return h * attn[..., None]


if __name__ == "__main__":
    key = jax.random.PRNGKey(0)
    k1, k2, k3 = jax.random.split(key, 3)

    # Small shapes consistent with the module: (B, S, H) hidden states,
    # K = len(key_words).
    B, S, H, K = 2, 8, 32, 8
    hidden_states = jax.random.normal(k1, (B, S, H), dtype=jnp.float32)
    proj_weight = jax.random.normal(k2, (K, H), dtype=jnp.float32) / jnp.sqrt(H)
    proj_bias = jax.random.normal(k3, (K,), dtype=jnp.float32) * 0.01
    kw_weights = jnp.ones((K,), dtype=jnp.float32)   # nn.Parameter(torch.ones(K))

    out = jax.block_until_ready(
        keyword_self_attention(hidden_states, proj_weight, proj_bias, kw_weights))
    ref = _reference(hidden_states, proj_weight, proj_bias, kw_weights)
    assert out.shape == (B, S, H)
    assert jnp.allclose(out, ref, atol=1e-5, rtol=1e-5), "f32 mismatch vs reference"

    # Ragged-rows path: B*S not a multiple of the row tile (exercises the
    # cdiv grid + masked last block with a tiny forced tile).
    B2, S2 = 3, 7
    h2 = jax.random.normal(k1, (B2, S2, H), dtype=jnp.float32)
    out2 = jax.block_until_ready(
        keyword_self_attention(h2, proj_weight, proj_bias, kw_weights, row_tile=8))
    ref2 = _reference(h2, proj_weight, proj_bias, kw_weights)
    assert jnp.allclose(out2, ref2, atol=1e-5, rtol=1e-5), "ragged-M mismatch"

    # bf16 path (looser tolerance; scale math stays in f32 inside the kernel).
    h3 = hidden_states.astype(jnp.bfloat16)
    out3 = jax.block_until_ready(
        keyword_self_attention(h3, proj_weight, proj_bias, kw_weights))
    ref3 = _reference(h3, proj_weight, proj_bias, kw_weights)
    assert jnp.allclose(out3.astype(jnp.float32), ref3, atol=5e-2, rtol=5e-2), \
        "bf16 mismatch vs reference"

    print("KERNEL_OK")
</pallas_src>

<mosaic_0001>
module attributes {stable_mosaic.version = 11 : i64} {
  func.func @_keyword_attn_kernel(%arg0: i32, %arg1: memref<8x32xf32, #tpu.memory_space<vmem>>, %arg2: memref<32x8xf32, #tpu.memory_space<vmem>>, %arg3: memref<2x8xf32, #tpu.memory_space<vmem>>, %arg4: memref<8x32xf32, #tpu.memory_space<vmem>>) attributes {dimension_semantics = [#tpu.dimension_semantics<parallel>], iteration_bounds = array<i64: 2>, scalar_prefetch = 0 : i64, scratch_operands = 0 : i64, tpu.core_type = #tpu.core_type<tc>, window_params = [{transform_indices = @transform_0, window_bounds = array<i64: 8, 32>}, {pipeline_mode = #tpu.pipeline_mode<synchronous>, transform_indices = @transform_1, window_bounds = array<i64: 32, 8>}, {pipeline_mode = #tpu.pipeline_mode<synchronous>, transform_indices = @transform_2, window_bounds = array<i64: 2, 8>}, {transform_indices = @transform_3, window_bounds = array<i64: 8, 32>}]} {
    %c0 = arith.constant 0 : index
    %c0_0 = arith.constant 0 : index
    %0 = vector.load %arg1[%c0, %c0_0] : memref<8x32xf32, #tpu.memory_space<vmem>>, vector<8x32xf32>
    %c0_1 = arith.constant 0 : index
    %c0_2 = arith.constant 0 : index
    %1 = vector.load %arg3[%c0_1, %c0_2] : memref<2x8xf32, #tpu.memory_space<vmem>>, vector<2x8xf32>
    %2 = vector.extract_strided_slice %1 {offsets = [0, 0], sizes = [1, 8], strides = [1, 1]} : vector<2x8xf32> to vector<1x8xf32>
    %3 = vector.extract_strided_slice %1 {offsets = [1, 0], sizes = [1, 8], strides = [1, 1]} : vector<2x8xf32> to vector<1x8xf32>
    %c0_3 = arith.constant 0 : index
    %c0_4 = arith.constant 0 : index
    %4 = vector.load %arg2[%c0_3, %c0_4] : memref<32x8xf32, #tpu.memory_space<vmem>>, vector<32x8xf32>
    %cst = arith.constant dense<0.000000e+00> : vector<8x8xf32>
    %5 = tpu.matmul %0, %4, %cst {dimension_numbers = #tpu.dot_dimension_numbers<[1], [0], [0], [1], [0, 0, 1, 1], [], []>} : vector<8x32xf32>, vector<32x8xf32>, vector<8x8xf32> -> vector<8x8xf32>
    %6 = vector.broadcast %2 : vector<1x8xf32> to vector<8x8xf32>
    %7 = arith.addf %5, %6 : vector<8x8xf32>
    %8 = math.tanh %7 : vector<8x8xf32>
    %9 = vector.broadcast %3 : vector<1x8xf32> to vector<8x8xf32>
    %10 = arith.mulf %8, %9 : vector<8x8xf32>
    %cst_5 = arith.constant dense<0.000000e+00> : vector<8xf32>
    %11 = vector.multi_reduction <add>, %10, %cst_5 [1] : vector<8x8xf32> to vector<8xf32>
    %12 = vector.shape_cast %11 : vector<8xf32> to vector<8x1xf32>
    %13 = vector.broadcast %12 : vector<8x1xf32> to vector<8x32xf32>
    %14 = arith.mulf %0, %13 : vector<8x32xf32>
    %c0_6 = arith.constant 0 : index
    %c0_7 = arith.constant 0 : index
    %15 = vector.load %arg4[%c0_6, %c0_7] : memref<8x32xf32, #tpu.memory_space<vmem>>, vector<8x32xf32>
    tpu.vector_store %arg4[%c0_6, %c0_7], %14 {strides = array<i32>} : memref<8x32xf32, #tpu.memory_space<vmem>>, vector<8x32xf32>,
    return
  }
  func.func @transform_0(%arg0: i32) -> (i32, i32) {
    %c0_i32 = arith.constant 0 : i32
    %c0_i32_0 = arith.constant 0 : i32
    return %arg0, %c0_i32 : i32, i32
  }
  func.func @transform_1(%arg0: i32) -> (i32, i32) {
    %c0_i32 = arith.constant 0 : i32
    %c0_i32_0 = arith.constant 0 : i32
    %c0_i32_1 = arith.constant 0 : i32
    return %c0_i32, %c0_i32_0 : i32, i32
  }
  func.func @transform_2(%arg0: i32) -> (i32, i32) {
    %c0_i32 = arith.constant 0 : i32
    %c0_i32_0 = arith.constant 0 : i32
    %c0_i32_1 = arith.constant 0 : i32
    return %c0_i32, %c0_i32_0 : i32, i32
  }
  func.func @transform_3(%arg0: i32) -> (i32, i32) {
    %c0_i32 = arith.constant 0 : i32
    %c0_i32_0 = arith.constant 0 : i32
    return %arg0, %c0_i32 : i32, i32
  }
}

</mosaic_0001>

<bundles_post_ra>
// kernel: tpu_custom_call.1
= control target key start
LH: loop header
LB: loop body
LE: loop exit
PB: predicated region body
PF: predicated region fallthrough
CT: control target
= control target key end

     0   :  { %8 = vsyncpa [#allocation3], 0  ;;  %s519_s0 = inlined_call_operand.vmem [shape: f32[16,32], index: 0, kind: input, shape index: {}]   ;;  %s520_s1 = inlined_call_operand.vmem [shape: f32[32,8], index: 1, kind: input, shape index: {}]   ;;  %s521_s2 = inlined_call_operand.vmem [shape: f32[2,8], index: 2, kind: input, shape index: {}]   ;;  %s522_s3 = inlined_call_operand.hbm [shape: f32[16,32], index: 3, kind: output, shape index: {}]  }
   0x1   :  { %10 = vsyncpa [#allocation3 + $0x1], 0  ;;  %s417_s12 = smov 0   ;;  %s419_s13 = smov 0  }
   0x2   :  { %s421_s14 = smov 0   ;;  %s423_s15 = smov 0  }
   0x3 LB: > { %s438_s16 = sadd.s32 4294967295, %s395_s15   ;;  %s281_s17 = sadd.s32 4294967294, %s395_s15   ;;  %s395_s15 = sphi %s423_s15, %s528_s15   ;;  %s391_s14 = sphi %s421_s14, %s527_s14   ;;  %s387_s13 = sphi %s419_s13, %s526_s13   ;;  %s383_s12 = sphi %s417_s12, %s525_s12  }
   0x4   : > { %s442_s18 = sadd.s32 1, %s395_s15   ;;  %s91_s19 = sadd.s32 1, %s391_s14 }
   0x5   : > { %s88_s20 = ssub.s32 %s395_s15, %s442_s18  ;;  %p101_p0 = scmp.ne.s32.totalorder %s391_s14, %s387_s13 }
   0x6   : > { %p89_p1 = scmp.eq.s32.totalorder %s88_s20, 0  ;;  %p102_p2 = scmp.eq.s32.totalorder %s438_s16, 1 }
   0x7   : > { %p107_p3 = scmp.ne.s32.totalorder %s387_s13, %s383_s12  ;;  %p108_p4 = scmp.eq.s32.totalorder %s281_s17, 1 }
   0x8   : > { %s453_s21 = scalar_select %p89_p1, %s391_s14, %s91_s19  }
   0x9   : > { %p455_p5 = por %p102_p2, %p101_p0  ;;  %p459_p6 = por %p108_p4, %p107_p3 }
   0xa   : > { %p284_p7 = scmp.ge.s32.totalorder %s395_s15, 1  ;;  %p139_p8 = scmp.lt.s32.totalorder %s395_s15, 3 }
   0xc   : > { %p140_p9 = pnand %p284_p7, %p139_p8 }
   0xd   : > { %p162_p10 = scmp.lt.s32.totalorder (!%p140_p9), %s438_s16, 1  ;;  %s159_s17 = sand.u32 (!%p140_p9), 1, %s387_s13  }
   0xe   : > { %143 = sbr.rel (%p140_p9) target bundleno = 286 (0x11e), region = 32  ;;  %s285_s19 = sshll.u32 (!%p140_p9), %s159_s17, 3 }
   0xf   : > { %s289_s20 = sshll.u32 (!%p140_p9), %s438_s16, 3  ;;  %s161_s27 = scalar_lea.vmem (!%p140_p9), [#allocation2], %s285_s19 }
  0x10   : > { %s217_s26 = scalar_lea.hbm (!%p140_p9), %s522_s3, %s289_s20  ;;  %s219_s28 = sshll.u32 (!%p140_p9), %s161_s27, 4  ;;  %s220_s28 = int_to_ptr.vmem [resolvable:$true] %s219_s28 }
  0x11   : > { %s221_s29 = sshll.u32 (!%p140_p9), %s217_s26, 4  ;;  %s353_s7 = scalar_lea.hbm (!%p140_p9), %s522_s3, 16  ;;  %s222_s29 = int_to_ptr.hbm [resolvable:$true] %s221_s29 }
  0x12   : > { %s347_s4 = sshra.s32 (!%p140_p9), %s222_s29, 4  ;;  %s348_s4 = int_to_ptr.hbm [resolvable:$true] %s347_s4 }
  0x13   : > { %v171_v0 = vld [vmem:[%s520_s1 + $0x18] sm:$0xff]  ;;  %v170_v1 = vld [vmem:[%s520_s1 + $0x10] sm:$0xff]  ;;  %v169_v2 = vld [vmem:[%s520_s1 + $0x8] sm:$0xff]  ;;  %s163_s30 = scalar_select %p162_p10, %s438_s16, 1  ;;  %vm173_vm0 = vcmask 261120   ;;  %vm200_vm1 = vcmask 64512  }
  0x14   : > { %189 = vmatpush.msra.mxu0 %v171_v0  ;;  %v168_v3 = vld [vmem:[%s520_s1] sm:$0xff]  ;;  %s349_s5 = scalar_lea.hbm %s348_s4, 8  ;;  %p354_p0 = scmp.lt.s32.totalorder %s348_s4, %s522_s3 }
  0x15   : > { %s286_s6 = sshll.u32 %s163_s30, 3  ;;  %v167_v5 = vld [vmem:[%s521_s2] sm:$0x3]  ;;  %s207_s30 = scalar_lea.sflag [#allocation3], %s159_s17 }
  0x16   : > { %190 = vmatpush.msra.mxu0 %v170_v1  ;;  %s165_s9 = scalar_lea.vmem %s519_s0, %s286_s6  ;;  %v172_v6 = vperm.slane %v167_v5, 0  ;;  %v198_v9 = vperm.slane %v167_v5, 1  ;;  %p350_p11 = scmp.ne.s32.totalorder %s348_s4, %s349_s5 }
  0x17   : > { %v166_v4 = vld [vmem:[%s165_s9] sm:$0xff]  ;;  %p355_p1 = scmp.lt.s32.totalorder %s353_s7, %s349_s5 }
  0x18   : > { %191 = vmatpush.msra.mxu0 %v169_v2  ;;  %p351_p12 = pnand %p350_p11, %p455_p5 }
  0x19   : > { %p356_p2 = por %p355_p1, %p354_p0 }
  0x1a   : > { %192 = vmatpush.msra.mxu0 %v168_v3  ;;  %p352_p13 = pneg %p351_p12 }
  0x1b   : > { %287 = vmatmul.msk.f32.vlgmr.msra.gmra.mxu0 %vm173_vm0, %v166_v4 }
  0x1c   : > { %p357_p3 = pnand %p356_p2, %p352_p13 }
  0x98   : > { %v194_v7 = vpop.f32.mrf.mxu0 }
  0x99   : > { %v195_v8 = vadd.f32 %v194_v7, %v172_v6 }
  0x9b   : > { %331 = vtanh.f32 %v195_v8 }
  0xa1   : > { %v332_v10 = vpop.eup %331 }
  0xa2   : > { %v199_v11 = vmul.f32 %v332_v10, %v198_v9 }
  0xa4   : > { %v201_v12 = vsel %vm200_vm1, %v199_v11, 0.0 }
  0xa5   : > { %202 = vadd.xlane.f32.xlu0 %v201_v12 }
 0x118   : > { %v203_v13 = vpop.xlane.xlu0 %202 }
 0x119   : > { %v204_v14 = vmul.f32 %v203_v13, %v166_v4 }
 0x11b   : > { %205 = vst.msk [vmem:[%s161_s27] sm:$0xff] %vm173_vm0, %v204_v14 }
 0x11c   : > { %360 = shalt.err (!%p357_p3)
}
 0x11d   : > { %292 = dma.vmem_to_hbm [thread:$0]  (%p455_p5), %s220_s28, 128, %s222_s29, %s207_s30  }
 0x11e PF: > { %p298_p4 = scmp.ge.s32.totalorder %s395_s15, 2  ;;  %s233_s10 = sand.u32 1, %s383_s12  }
 0x11f   : > { %s234_s11 = scalar_lea.sflag [#allocation3], %s233_s10 }
 0x120   : > { %p295_p7 = pnand %p298_p4, %p459_p6 }
 0x122   : > { %p296_p8 = pneg %p295_p7 }
 0x124   : > { %378 = dma.done.wait (%p296_p8), %s234_s11, 128  }
 0x125   : > { %380 = vsyncadd (%p296_p8), %s234_s11, 4294967168  ;;  %p13_p9 = scmp.ge.s32.totalorder %s442_s18, 4   ;;  %s525_s12 = smov %s387_s13 }
 0x126   : > { %s526_s13 = smov %s391_s14  ;;  %s527_s14 = smov %s453_s21 }
 0x127   : > { %s528_s15 = smov %s442_s18  ;;  %15 = sbr.rel (!%p13_p9) target bundleno = 3 (0x3), region = 67 }
 0x12c   :  { %240 = vsyncpa [#allocation3], 1 }
 0x12d   :  { %242 = vsyncpa [#allocation3 + $0x1], 1 }

</bundles_post_ra>
